<compile_context>
chip_gen: v7x
topology: tpu7x:2x2x1
jax: 0.10.0
libtpu: 0.0.40
codegen_flags: <defaults>
</compile_context>

<pallas_src>
import jax
import jax.numpy as jnp
import numpy as np
from jax.experimental import pallas as pl
from jax.experimental.pallas import tpu as pltpu


def _attention_kernel(h_ref, enc_ref, wh_ref, we_ref, b_ref, v_ref, out_ref):
    # h_ref:   (TB, H)        enc_ref: (TB, S, H)
    # wh_ref:  (H, H)         we_ref:  (H, H)
    # b_ref:   (1, H)         v_ref:   (1, H)
    # out_ref: (TB, S)
    tb, s, hdim = enc_ref.shape

    # Hidden contribution (shared across the sequence axis): (TB, H).
    hw = jnp.dot(h_ref[...], wh_ref[...], preferred_element_type=jnp.float32)
    hw = hw + b_ref[...].astype(jnp.float32)

    # Encoder contribution: one big (TB*S, H) x (H, H) MXU matmul.
    enc = enc_ref[...].reshape(tb * s, hdim)
    ew = jnp.dot(enc, we_ref[...], preferred_element_type=jnp.float32)

    # energy = tanh(cat([h, enc]) @ W + b), concat removed via the weight split.
    energy = jnp.tanh(ew.reshape(tb, s, hdim) + hw[:, None, :])        # (TB, S, H) f32

    # scores = <energy, v> over H: VPU multiply + lane reduce (no transpose,
    # no M=1 matmul).
    scores = jnp.sum(energy * v_ref[...].astype(jnp.float32), axis=-1)  # (TB, S)

    # Row softmax over the sequence axis.
    m = jnp.max(scores, axis=-1, keepdims=True)
    e = jnp.exp(scores - m)
    p = e * pl.reciprocal(jnp.sum(e, axis=-1, keepdims=True), approx=True)
    out_ref[...] = p.astype(out_ref.dtype)


def attention_forward(hidden, encoder_outputs, attn_w, attn_b, v, block_b=None):
    """
    hidden:           (B, 1, H)
    encoder_outputs:  (B, S, H)
    attn_w:           (2H, H)   (already transposed: x @ attn_w == nn.Linear)
    attn_b:           (1, H)
    v:                (1, H)
    returns:          (B, 1, S)
    """
    B, S, H = encoder_outputs.shape
    out_dtype = encoder_outputs.dtype
    itemsize = jnp.dtype(encoder_outputs.dtype).itemsize

    # Split the concat weight: rows [0, H) act on hidden, rows [H, 2H) on enc.
    w_h = attn_w[:H]
    w_e = attn_w[H:]

    # Batch tile: aim for >= 256 encoder rows per grid step; keep the sublane
    # dim 8-aligned when actually tiling (a single full-batch block is exempt).
    if block_b is None:
        block_b = max(1, pl.cdiv(256, S))
    if block_b >= B:
        block_b = B
    else:
        block_b = max(8, (block_b // 8) * 8)
    b_pad = pl.cdiv(B, block_b) * block_b

    h2 = hidden.reshape(B, H)
    enc = encoder_outputs
    if b_pad != B:
        h2 = jnp.pad(h2, ((0, b_pad - B), (0, 0)))
        enc = jnp.pad(enc, ((0, b_pad - B), (0, 0), (0, 0)))

    grid = (b_pad // block_b,)

    # VMEM budget: double-buffered blocks plus weights, with headroom; capped
    # so the same setting is safe on v7x's smaller VMEM.
    block_bytes = (
        2 * block_b * S * H * itemsize        # encoder_outputs block
        + 2 * block_b * H * itemsize          # hidden block
        + 2 * block_b * S * itemsize          # output block
        + 2 * (2 * H * H + 2 * H) * 4         # weights / bias / v
    )
    vmem_limit = int(min(64 << 20, max(16 << 20, 8 * block_bytes)))

    cost = pl.CostEstimate(
        flops=2 * b_pad * (S + 1) * H * H,
        transcendentals=b_pad * S * (H + 1),
        bytes_accessed=(b_pad * S * H + b_pad * H + b_pad * S) * itemsize
        + (2 * H * H + 2 * H) * 4,
    )

    out_flat = pl.pallas_call(
        _attention_kernel,
        out_shape=jax.ShapeDtypeStruct((b_pad, S), out_dtype),
        grid_spec=pltpu.PrefetchScalarGridSpec(
            num_scalar_prefetch=0,
            grid=grid,
            in_specs=[
                pl.BlockSpec((block_b, H), lambda b: (b, 0)),        # hidden
                pl.BlockSpec((block_b, S, H), lambda b: (b, 0, 0)),  # encoder_outputs
                pl.BlockSpec((H, H), lambda b: (0, 0)),              # W_h
                pl.BlockSpec((H, H), lambda b: (0, 0)),              # W_e
                pl.BlockSpec((1, H), lambda b: (0, 0)),              # bias
                pl.BlockSpec((1, H), lambda b: (0, 0)),              # v
            ],
            out_specs=pl.BlockSpec((block_b, S), lambda b: (b, 0)),
        ),
        compiler_params=pltpu.CompilerParams(
            dimension_semantics=("parallel",),
            vmem_limit_bytes=vmem_limit,
        ),
        cost_estimate=cost,
    )(h2, enc, w_h, w_e, attn_b, v)

    return out_flat[:B][:, None, :]


def attention_reference(hidden, encoder_outputs, attn_w, attn_b, v):
    B, S, H = encoder_outputs.shape
    h_rep = jnp.broadcast_to(hidden, (B, S, H))
    x = jnp.concatenate([h_rep, encoder_outputs], axis=-1)     # (B, S, 2H)
    energy = jnp.tanh(x @ attn_w + attn_b)                     # (B, S, H)
    scores = jnp.einsum("h,bsh->bs", v[0], energy)             # (B, S)
    p = jax.nn.softmax(scores, axis=1)
    return p[:, None, :]                                        # (B, 1, S)


if __name__ == "__main__":
    def run_case(B, S, H, key):
        k_h, k_e, k_w, k_b, k_v = jax.random.split(key, 5)
        hidden = jax.random.normal(k_h, (B, 1, H), dtype=jnp.float32)
        encoder_outputs = jax.random.normal(k_e, (B, S, H), dtype=jnp.float32)

        # Deterministic parameter init mimicking nn.Linear / the uniform v init.
        stdv_lin = 1.0 / np.sqrt(2 * H)
        attn_w = jax.random.uniform(
            k_w, (2 * H, H), minval=-stdv_lin, maxval=stdv_lin, dtype=jnp.float32
        )  # stored transposed relative to PyTorch so kernel does x @ attn_w
        attn_b = jax.random.uniform(
            k_b, (1, H), minval=-stdv_lin, maxval=stdv_lin, dtype=jnp.float32
        )
        stdv_v = 1.0 / np.sqrt(H)
        v = jax.random.uniform(
            k_v, (1, H), minval=-stdv_v, maxval=stdv_v, dtype=jnp.float32
        )

        out = attention_forward(hidden, encoder_outputs, attn_w, attn_b, v)
        out = jax.block_until_ready(out)

        ref = attention_reference(hidden, encoder_outputs, attn_w, attn_b, v)
        # Tolerance loosened for the approx EUP reciprocal (~2^-12 rel error).
        np.testing.assert_allclose(np.asarray(out), np.asarray(ref),
                                   rtol=2e-3, atol=2e-4)

    key = jax.random.PRNGKey(0)
    k1, k2 = jax.random.split(key)
    run_case(2, 8, 32, k1)    # small shape from the spec: single full-batch block
    run_case(80, 8, 32, k2)   # exercises batch tiling (TB=32) + tail padding
    print("KERNEL_OK")
</pallas_src>

<mosaic_0001>
module attributes {stable_mosaic.version = 11 : i64} {
  func.func @_attention_kernel(%arg0: i32, %arg1: memref<2x32xf32, #tpu.memory_space<vmem>>, %arg2: memref<2x8x32xf32, #tpu.memory_space<vmem>>, %arg3: memref<32x32xf32, #tpu.memory_space<vmem>>, %arg4: memref<32x32xf32, #tpu.memory_space<vmem>>, %arg5: memref<1x32xf32, #tpu.memory_space<vmem>>, %arg6: memref<1x32xf32, #tpu.memory_space<vmem>>, %arg7: memref<2x8xf32, #tpu.memory_space<vmem>>) attributes {dimension_semantics = [#tpu.dimension_semantics<parallel>], iteration_bounds = array<i64: 1>, scalar_prefetch = 0 : i64, scratch_operands = 0 : i64, tpu.core_type = #tpu.core_type<tc>, window_params = [{transform_indices = @transform_0, window_bounds = array<i64: 2, 32>}, {transform_indices = @transform_1, window_bounds = array<i64: 2, 8, 32>}, {pipeline_mode = #tpu.pipeline_mode<synchronous>, transform_indices = @transform_2, window_bounds = array<i64: 32, 32>}, {pipeline_mode = #tpu.pipeline_mode<synchronous>, transform_indices = @transform_3, window_bounds = array<i64: 32, 32>}, {pipeline_mode = #tpu.pipeline_mode<synchronous>, transform_indices = @transform_4, window_bounds = array<i64: 1, 32>}, {pipeline_mode = #tpu.pipeline_mode<synchronous>, transform_indices = @transform_5, window_bounds = array<i64: 1, 32>}, {transform_indices = @transform_6, window_bounds = array<i64: 2, 8>}]} {
    %c0 = arith.constant 0 : index
    %c0_0 = arith.constant 0 : index
    %0 = vector.load %arg1[%c0, %c0_0] : memref<2x32xf32, #tpu.memory_space<vmem>>, vector<2x32xf32>
    %c0_1 = arith.constant 0 : index
    %c0_2 = arith.constant 0 : index
    %1 = vector.load %arg3[%c0_1, %c0_2] : memref<32x32xf32, #tpu.memory_space<vmem>>, vector<32x32xf32>
    %cst = arith.constant dense<0.000000e+00> : vector<2x32xf32>
    %2 = tpu.matmul %0, %1, %cst {dimension_numbers = #tpu.dot_dimension_numbers<[1], [0], [0], [1], [0, 0, 1, 1], [], []>} : vector<2x32xf32>, vector<32x32xf32>, vector<2x32xf32> -> vector<2x32xf32>
    %c0_3 = arith.constant 0 : index
    %c0_4 = arith.constant 0 : index
    %3 = vector.load %arg5[%c0_3, %c0_4] : memref<1x32xf32, #tpu.memory_space<vmem>>, vector<1x32xf32>
    %4 = vector.broadcast %3 : vector<1x32xf32> to vector<2x32xf32>
    %5 = arith.addf %2, %4 : vector<2x32xf32>
    %c0_5 = arith.constant 0 : index
    %c0_6 = arith.constant 0 : index
    %c0_7 = arith.constant 0 : index
    %6 = vector.load %arg2[%c0_5, %c0_6, %c0_7] : memref<2x8x32xf32, #tpu.memory_space<vmem>>, vector<2x8x32xf32>
    %7 = vector.shape_cast %6 : vector<2x8x32xf32> to vector<16x32xf32>
    %c0_8 = arith.constant 0 : index
    %c0_9 = arith.constant 0 : index
    %8 = vector.load %arg4[%c0_8, %c0_9] : memref<32x32xf32, #tpu.memory_space<vmem>>, vector<32x32xf32>
    %cst_10 = arith.constant dense<0.000000e+00> : vector<16x32xf32>
    %9 = tpu.matmul %7, %8, %cst_10 {dimension_numbers = #tpu.dot_dimension_numbers<[1], [0], [0], [1], [0, 0, 1, 1], [], []>} : vector<16x32xf32>, vector<32x32xf32>, vector<16x32xf32> -> vector<16x32xf32>
    %10 = vector.shape_cast %9 : vector<16x32xf32> to vector<2x8x32xf32>
    %11 = vector.shape_cast %5 : vector<2x32xf32> to vector<2x1x32xf32>
    %12 = vector.broadcast %11 : vector<2x1x32xf32> to vector<2x8x32xf32>
    %13 = arith.addf %10, %12 : vector<2x8x32xf32>
    %14 = math.tanh %13 : vector<2x8x32xf32>
    %c0_11 = arith.constant 0 : index
    %c0_12 = arith.constant 0 : index
    %15 = vector.load %arg6[%c0_11, %c0_12] : memref<1x32xf32, #tpu.memory_space<vmem>>, vector<1x32xf32>
    %16 = vector.shape_cast %15 : vector<1x32xf32> to vector<1x1x32xf32>
    %17 = vector.broadcast %16 : vector<1x1x32xf32> to vector<2x8x32xf32>
    %18 = arith.mulf %14, %17 : vector<2x8x32xf32>
    %cst_13 = arith.constant dense<0.000000e+00> : vector<2x8xf32>
    %19 = vector.multi_reduction <add>, %18, %cst_13 [2] : vector<2x8x32xf32> to vector<2x8xf32>
    %cst_14 = arith.constant dense<0xFF800000> : vector<2xf32>
    %20 = vector.multi_reduction <maximumf>, %19, %cst_14 [1] : vector<2x8xf32> to vector<2xf32>
    %21 = vector.shape_cast %20 : vector<2xf32> to vector<2x1xf32>
    %22 = vector.broadcast %21 : vector<2x1xf32> to vector<2x8xf32>
    %23 = arith.subf %19, %22 : vector<2x8xf32>
    %24 = math.exp %23 : vector<2x8xf32>
    %cst_15 = arith.constant dense<0.000000e+00> : vector<2xf32>
    %25 = vector.multi_reduction <add>, %24, %cst_15 [1] : vector<2x8xf32> to vector<2xf32>
    %26 = vector.shape_cast %25 : vector<2xf32> to vector<2x1xf32>
    %27 = tpu.reciprocal %26 {approx = true} : vector<2x1xf32> -> vector<2x1xf32>
    %28 = vector.broadcast %27 : vector<2x1xf32> to vector<2x8xf32>
    %29 = arith.mulf %24, %28 : vector<2x8xf32>
    %c0_16 = arith.constant 0 : index
    %c0_17 = arith.constant 0 : index
    %30 = vector.load %arg7[%c0_16, %c0_17] : memref<2x8xf32, #tpu.memory_space<vmem>>, vector<2x8xf32>
    tpu.vector_store %arg7[%c0_16, %c0_17], %29 {strides = array<i32>} : memref<2x8xf32, #tpu.memory_space<vmem>>, vector<2x8xf32>,
    return
  }
  func.func @transform_0(%arg0: i32) -> (i32, i32) {
    %c0_i32 = arith.constant 0 : i32
    %c0_i32_0 = arith.constant 0 : i32
    return %arg0, %c0_i32 : i32, i32
  }
  func.func @transform_1(%arg0: i32) -> (i32, i32, i32) {
    %c0_i32 = arith.constant 0 : i32
    %c0_i32_0 = arith.constant 0 : i32
    %c0_i32_1 = arith.constant 0 : i32
    return %arg0, %c0_i32, %c0_i32_0 : i32, i32, i32
  }
  func.func @transform_2(%arg0: i32) -> (i32, i32) {
    %c0_i32 = arith.constant 0 : i32
    %c0_i32_0 = arith.constant 0 : i32
    %c0_i32_1 = arith.constant 0 : i32
    return %c0_i32, %c0_i32_0 : i32, i32
  }
  func.func @transform_3(%arg0: i32) -> (i32, i32) {
    %c0_i32 = arith.constant 0 : i32
    %c0_i32_0 = arith.constant 0 : i32
    %c0_i32_1 = arith.constant 0 : i32
    return %c0_i32, %c0_i32_0 : i32, i32
  }
  func.func @transform_4(%arg0: i32) -> (i32, i32) {
    %c0_i32 = arith.constant 0 : i32
    %c0_i32_0 = arith.constant 0 : i32
    %c0_i32_1 = arith.constant 0 : i32
    return %c0_i32, %c0_i32_0 : i32, i32
  }
  func.func @transform_5(%arg0: i32) -> (i32, i32) {
    %c0_i32 = arith.constant 0 : i32
    %c0_i32_0 = arith.constant 0 : i32
    %c0_i32_1 = arith.constant 0 : i32
    return %c0_i32, %c0_i32_0 : i32, i32
  }
  func.func @transform_6(%arg0: i32) -> (i32, i32) {
    %c0_i32 = arith.constant 0 : i32
    %c0_i32_0 = arith.constant 0 : i32
    return %arg0, %c0_i32 : i32, i32
  }
}

</mosaic_0001>

<bundles_post_ra>
// kernel: tpu_custom_call.1
= control target key start
LH: loop header
LB: loop body
LE: loop exit
PB: predicated region body
PF: predicated region fallthrough
CT: control target
= control target key end

     0   :  { %11 = vsyncpa [#allocation3], 0  ;;  %s742_s0 = inlined_call_operand.hbm [shape: f32[2,32], index: 0, kind: input, shape index: {}]   ;;  %s743_s1 = inlined_call_operand.hbm [shape: f32[2,8,32], index: 1, kind: input, shape index: {}]   ;;  %s744_s2 = inlined_call_operand.hbm [shape: f32[32,32], index: 2, kind: input, shape index: {}]   ;;  %s745_s3 = inlined_call_operand.hbm [shape: f32[32,32], index: 3, kind: input, shape index: {}]   ;;  %s746_s4 = inlined_call_operand.vmem [shape: f32[1,32], index: 4, kind: input, shape index: {}]   ;;  %s747_s5 = inlined_call_operand.vmem [shape: f32[1,32], index: 5, kind: input, shape index: {}]   ;;  %s748_s6 = inlined_call_operand.hbm [shape: f32[2,8], index: 6, kind: output, shape index: {}]  }
   0x1   :  { %12 = vsyncpa [#allocation6], 0 }
   0x2   :  { %13 = vsyncpa [#allocation9], 0 }
   0x3   :  { %14 = vsyncpa [#allocation4], 0  ;;  %s603_s21 = smov [#allocation5]   ;;  %s485_s25 = scalar_lea.hbm %s743_s1, 256 }
   0x4   :  { %s30_s22 = sshll.u32 %s603_s21, 4  ;;  %p486_p0 = scmp.ne.s32.totalorder %s743_s1, %s485_s25  ;;  %s31_s22 = int_to_ptr.vmem [resolvable:$true] %s30_s22 }
   0x5   :  { %p489_p1 = scmp.lt.u32.totalorder %s485_s25, %s743_s1 }
   0x7   :  { %p491_p2 = pnand %p489_p1, %p486_p0 }
   0x9   :  { %494 = shalt.err (!%p491_p2)
}
   0xa   :  { %s495_s30 = scalar_lea.vmem %s31_s22, 256  ;;  %p500_p4 = scmp.lt.s32.totalorder %s31_s22, %s31_s22 }
   0xb   :  { %p496_p3 = scmp.ne.s32.totalorder %s31_s22, %s495_s30  ;;  %p501_p5 = scmp.lt.s32.totalorder %s495_s30, %s495_s30 }
   0xd   :  { %p502_p6 = por %p501_p5, %p500_p4 }
   0xf   :  { %p503_p7 = pnand %p502_p6, %p496_p3 }
  0x11   :  { %506 = shalt.err (!%p503_p7)
}
  0x12   :  { %s604_s7 = smov 128   ;;  %s605_s8 = smov 8  }
  0x13   :  { %36 = dma.hbm_to_vmem [thread:$0]  %s743_s1, 256, %s31_s22, [#allocation6], %s604_s7, %s604_s7, %s605_s8  }
  0x14   :  { %s606_s11 = smov [#allocation2]   ;;  %s607_s13 = smov [#allocation7]  }
  0x15   :  { %s21_s12 = sshll.u32 %s606_s11, 4  ;;  %s42_s14 = sshll.u32 %s607_s13, 4  ;;  %s22_s12 = int_to_ptr.vmem [resolvable:$true] %s21_s12  ;;  %s43_s14 = int_to_ptr.vmem [resolvable:$true] %s42_s14 }
  0x16   :  { %s507_s17 = scalar_lea.hbm %s742_s0, 32 }
  0x17   :  { %p508_p8 = scmp.ne.s32.totalorder %s742_s0, %s507_s17  ;;  %p511_p9 = scmp.lt.u32.totalorder %s507_s17, %s742_s0 }
  0x19   :  { %p513_p10 = pnand %p511_p9, %p508_p8 }
  0x1b   :  { %516 = shalt.err (!%p513_p10)
}
  0x1c   :  { %s517_s1 = scalar_lea.vmem %s22_s12, 32  ;;  %p522_p12 = scmp.lt.s32.totalorder %s22_s12, %s22_s12 }
  0x1d   :  { %p518_p11 = scmp.ne.s32.totalorder %s22_s12, %s517_s1  ;;  %p523_p13 = scmp.lt.s32.totalorder %s517_s1, %s517_s1 }
  0x1f   :  { %p524_p0 = por %p523_p13, %p522_p12 }
  0x21   :  { %p525_p1 = pnand %p524_p0, %p518_p11 }
  0x23   :  { %528 = shalt.err (!%p525_p1)
}
  0x24   :  { %24 = dma.hbm_to_vmem [thread:$0]  %s742_s0, 32, %s22_s12, [#allocation3]  }
  0x25   :  { %s529_s26 = scalar_lea.hbm %s744_s2, 512 }
  0x26   :  { %p530_p2 = scmp.ne.s32.totalorder %s744_s2, %s529_s26  ;;  %p533_p3 = scmp.lt.u32.totalorder %s529_s26, %s744_s2 }
  0x28   :  { %p535_p4 = pnand %p533_p3, %p530_p2 }
  0x2a   :  { %538 = shalt.err (!%p535_p4)
}
  0x2b   :  { %s539_s9 = scalar_lea.vmem %s43_s14, 512  ;;  %p544_p6 = scmp.lt.s32.totalorder %s43_s14, %s43_s14 }
  0x2c   :  { %p540_p5 = scmp.ne.s32.totalorder %s43_s14, %s539_s9  ;;  %p545_p7 = scmp.lt.s32.totalorder %s539_s9, %s539_s9 }
  0x2e   :  { %p546_p8 = por %p545_p7, %p544_p6 }
  0x30   :  { %p547_p9 = pnand %p546_p8, %p540_p5 }
  0x32   :  { %550 = shalt.err (!%p547_p9)
}
  0x33   :  { %48 = dma.hbm_to_vmem [thread:$0]  %s744_s2, 512, %s43_s14, [#allocation6], %s604_s7, %s604_s7, %s605_s8  }
  0x34   :  { %s608_s11 = smov [#allocation8]   ;;  %s551_s16 = scalar_lea.hbm %s745_s3, 512 }
  0x35   :  { %s54_s12 = sshll.u32 %s608_s11, 4  ;;  %p552_p10 = scmp.ne.s32.totalorder %s745_s3, %s551_s16  ;;  %s55_s12 = int_to_ptr.vmem [resolvable:$true] %s54_s12 }
  0x36   :  { %p555_p11 = scmp.lt.u32.totalorder %s551_s16, %s745_s3 }
  0x38   :  { %p557_p12 = pnand %p555_p11, %p552_p10 }
  0x3a   :  { %560 = shalt.err (!%p557_p12)
}
  0x3b   :  { %s561_s21 = scalar_lea.vmem %s55_s12, 512  ;;  %p566_p0 = scmp.lt.s32.totalorder %s55_s12, %s55_s12 }
  0x3c   :  { %p562_p13 = scmp.ne.s32.totalorder %s55_s12, %s561_s21  ;;  %p567_p1 = scmp.lt.s32.totalorder %s561_s21, %s561_s21 }
  0x3e   :  { %p568_p2 = por %p567_p1, %p566_p0 }
  0x40   :  { %p569_p3 = pnand %p568_p2, %p562_p13 }
  0x42   :  { %572 = shalt.err (!%p569_p3)
}
  0x43   :  { %60 = dma.hbm_to_vmem [thread:$0]  %s745_s3, 512, %s55_s12, [#allocation9], %s604_s7, %s604_s7, %s605_s8  }
  0x44   :  { %595 = dma.done.wait [#allocation3], 32  }
  0x45   :  { %596 = vsyncadd [#allocation3], 4294967264 }
  0x46   :  { %597 = dma.done.wait [#allocation6], 768  }
  0x47   :  { %598 = vsyncadd [#allocation6], 4294966528 }
  0x48   :  { %599 = dma.done.wait [#allocation9], 512  }
  0x49   :  { %600 = vsyncadd [#allocation9], 4294966784  ;;  %v609_v0 = vmov 0.0|0.0   ;;  %vm610_vm0 = vmmov 0   ;;  %v611_v1 = vmov 0.0   ;;  %v78_v2 = vld [vmem:[#allocation7] sm:$0xff]  ;;  %v254_v19 = vlaneseq }
  0x4a   :  { %447 = vmatprep.subr.bf16.mxu0 %v609_v0  ;;  %433 = vmatprep.mubr.msk.f32.mxu0 %vm610_vm0, %v611_v1  ;;  %v79_v3 = vld [vmem:[#allocation7 + $0x8] sm:$0xff]  ;;  %v80_v4 = vld [vmem:[#allocation7 + $0x10] sm:$0xff]  ;;  %v81_v6 = vld [vmem:[#allocation7 + $0x18] sm:$0xff]  ;;  %vm89_vm1 = vcmask 261120   ;;  %v612_v17 = vmov 1966171168  }
  0x4b   :  { %v448_v5 = vpack.c.bf16 %v79_v3, %v78_v2  ;;  %v165_v7 = vld [vmem:[#allocation8] sm:$0xff]  ;;  %v166_v8 = vld [vmem:[#allocation8 + $0x8] sm:$0xff]  ;;  %v167_v10 = vld [vmem:[#allocation8 + $0x10] sm:$0xff]  ;;  %v451_v12 = vpack.c.bf16 %v81_v6, %v80_v4  ;;  %v252_v18 = vunpack.c.l.s4 %v612_v17  ;;  %v710_v21 = vshrl.u32 %v254_v19, 7 }
  0x4c   :  { %v453_v9 = vpack.c.bf16 %v166_v8, %v165_v7  ;;  %v168_v11 = vld [vmem:[#allocation8 + $0x18] sm:$0xff]  ;;  %v163_v14 = vld [vmem:[#allocation5] sm:$0xff]  ;;  %v77_v15 = vld [vmem:[#allocation2] sm:$0x3]  ;;  %v305_v45 = vand.u32 127, %v254_v19  ;;  %vm314_vm2 = vcmask 1041409  }
  0x4d   :  { %449 = vmatpush3.bf16.msra.mxu0 %v448_v5  ;;  %v457_v13 = vpack.c.bf16 %v168_v11, %v167_v10  ;;  %444 = vmatprep.mubr.msk.f32.mxu1 %vm89_vm1, %v163_v14  ;;  %v164_v16 = vld [vmem:[#allocation5 + $0x8] sm:$0xff]  ;;  %v253_v20 = vunpack.c.0.s8 %v252_v18  ;;  %v409_v22 = vld [vmem:[%s746_s4] ss:$0 sm:$0xff]  ;;  %v275_v29 = vsub.s32 0, %v710_v21  ;;  %vm317_vm3 = vcmask 58368  }
  0x4e   :  { %450 = vmatprep.subr.bf16.mxu0 %v609_v0  ;;  %454 = vmatprep.subr.bf16.mxu1 %v453_v9  ;;  %v413_v38 = vld [vmem:[%s747_s5] ss:$0 sm:$0xff]  ;;  %v308_v47 = vsub.s32 %v305_v45, %v710_v21  ;;  %v613_v53 = vmov 0   ;;  %v328_v54 = vsub.s32 1, %v710_v21  ;;  %s614_s5 = smov [#allocation10]  }
  0x4f   :  { %456 = vmatpush3.bf16.msra.mxu1 %v453_v9  ;;  %v256_v23 = vsub.s32 %v253_v20, %v710_v21  ;;  %474 = vset.pattern.permute.xlu0 %v613_v53  ;;  %s398_s1 = sshll.u32 %s614_s5, 4  ;;  %s399_s1 = int_to_ptr.vmem [resolvable:$true] %s398_s1 }
  0x50   :  { %458 = vmatprep.subr.bf16.mxu1 %v457_v13  ;;  %473 = vset.pattern.permute.xlu1 %v613_v53  ;;  %s573_s22 = scalar_lea.vmem %s399_s1, 32  ;;  %p578_p5 = scmp.lt.s32.totalorder %s399_s1, %s399_s1 }
  0x51   :  { %452 = vmatpush3.bf16.msra.mxu0 %v451_v12  ;;  %p574_p4 = scmp.ne.s32.totalorder %s399_s1, %s573_s22  ;;  %p579_p6 = scmp.lt.s32.totalorder %s573_s22, %s573_s22 }
  0x53   :  { %460 = vmatpush3.bf16.msra.mxu1 %v457_v13  ;;  %p580_p7 = por %p579_p6, %p578_p5 }
  0x54   :  { %434 = vmatmul.mubr.msk.f32.vlgmr.msra.gmra.mrb[0].mxu0 %vm89_vm1, %v77_v15 }
  0x55   :  { %p581_p8 = pnand %p580_p7, %p574_p4 }
  0x56   :  { %445 = vmatmul.mubr.msk.f32.vlgmr.msra.gmra.mrb[0].mxu1 %vm89_vm1, %v164_v16 }
 0x127   :  { %v159_v24 = vpop.f32.mrb[0].mxu0 }
 0x128   :  { %v160_v25 = vadd.f32 %v409_v22, %v159_v24  ;;  %v435_v26 = vpop.f32.mrb[1].mxu0 }
 0x129   :  { %v446_v27 = vpop.f32.mrb[0].mxu1 }
 0x12a   :  { %v257_v28 = vrot.slane %v160_v25, %v256_v23  ;;  %v241_v30 = vpop.f32.mrb[1].mxu1 }
 0x12c   :  { %v258_v31 = vcombine.high %v257_v28, %v257_v28  ;;  %v265_v32 = vrot.slane %v257_v28, %v256_v23 }
 0x12e   :  { %v272_v33 = vrot.slane %v258_v31, %v256_v23  ;;  %v276_v34 = vrot.slane %v265_v32, %v275_v29 }
 0x130   :  { %v280_v35 = vrot.slane %v272_v33, %v275_v29  ;;  %v283_v36 = vadd.f32 %v276_v34, %v241_v30 }
 0x132   :  { %v284_v37 = vadd.f32 %v446_v27, %v280_v35  ;;  %475 = vtanh.f32 %v283_v36 }
 0x134   :  { %477 = vtanh.f32 %v284_v37 }
 0x13c   :  { %v476_v39 = vpop.eup %475 }
 0x13d   :  { %v294_v40 = vmul.f32 %v476_v39, %v413_v38 }
 0x13e   :  { %v478_v41 = vpop.eup %477 }
 0x13f   :  { %v296_v42 = vsel %vm89_vm1, %v294_v40, 0.0  ;;  %v295_v43 = vmul.f32 %v478_v41, %v413_v38 }
 0x140   :  { %297 = vadd.xlane.f32.xlu0 %v296_v42 }
 0x141   :  { %v299_v44 = vsel %vm89_vm1, %v295_v43, 0.0 }
 0x144   :  { %300 = vadd.xlane.f32.xlu0 %v299_v44 }
 0x1cd   :  { %v298_v46 = vpop.xlane.xlu0 %297 }
 0x1ce   :  { %v309_v49 = vrot.slane %v298_v46, %v308_v47 }
 0x1d1   :  { %v301_v48 = vpop.xlane.xlu0 %300 }
 0x1d2   :  { %v313_v50 = vrot.slane %v301_v48, %v308_v47 }
 0x1d4   :  { %v315_v51 = vsel %vm314_vm2, %v313_v50, %v309_v49 }
 0x1d5   :  { %v318_v52 = vsel %vm317_vm3, %v315_v51, -inf }
 0x1d6   :  { %319 = vmax.xlane.f32.xlu1 %v318_v52 }
 0x263   :  { %v320_v55 = vpop.xlane.xlu1 %319 }
 0x264   :  { %v325_v56 = vrot.slane %v320_v55, %v275_v29  ;;  %v329_v57 = vrot.slane %v320_v55, %v328_v54 }
 0x266   :  { %v332_v58 = vsub.f32 %v298_v46, %v325_v56  ;;  %v333_v59 = vsub.f32 %v301_v48, %v329_v57 }
 0x268   :  { %v334_v60 = vmul.f32 1.442695, %v332_v58  ;;  %v336_v61 = vmul.f32 1.442695, %v333_v59 }
 0x26a   :  { %479 = vpow2.f32 %v334_v60 }
 0x26b   :  { %481 = vpow2.f32 %v336_v61 }
 0x274   :  { %v480_v62 = vpop.eup %479 }
 0x275   :  { %v482_v63 = vpop.eup %481  ;;  %341 = vperm.xlu1 %473, %v480_v62  }
 0x276   :  { %344 = vperm.xlu0 %474, %v482_v63  }
 0x2f4   :  { %v342_v0 = vpop.permute.xlu1 %341 }
 0x2f5   :  { %v345_v1 = vpop.permute.xlu0 %344  ;;  %v349_v2 = vrot.slane %v342_v0, %v308_v47 }
 0x2f6   :  { %v353_v3 = vrot.slane %v345_v1, %v308_v47 }
 0x2f8   :  { %v354_v4 = vsel %vm314_vm2, %v353_v3, %v349_v2 }
 0x2f9   :  { %v356_v5 = vsel %vm317_vm3, %v354_v4, 0.0 }
 0x2fa   :  { %357 = vadd.xlane.f32.xlu1 %v356_v5 }
 0x387   :  { %v358_v6 = vpop.xlane.xlu1 %357 }
 0x388   :  { %483 = vrcp.f32 %v358_v6 }
 0x392   :  { %v484_v7 = vpop.eup %483 }
 0x393   :  { %v364_v8 = vrot.slane %v484_v7, %v275_v29  ;;  %v368_v10 = vrot.slane %v484_v7, %v328_v54 }
 0x395   :  { %v371_v9 = vmul.f32 %v480_v62, %v364_v8  ;;  %v372_v11 = vmul.f32 %v482_v63, %v368_v10 }
 0x397   :  { %376 = vperm.xlu0 %474, %v371_v9  }
 0x39b   :  { %379 = vperm.xlu0 %474, %v372_v11  }
 0x416   :  { %v377_v12 = vpop.permute.xlu0 %376 }
 0x417   :  { %v384_v14 = vrot.slane %v377_v12, %v308_v47 }
 0x41a   :  { %v380_v13 = vpop.permute.xlu0 %379 }
 0x41b   :  { %v388_v15 = vrot.slane %v380_v13, %v308_v47 }
 0x41d   :  { %v389_v16 = vsel %vm314_vm2, %v388_v15, %v384_v14 }
 0x41e   :  { %391 = vst.msk [vmem:[#allocation10] sm:$0x3] %vm317_vm3, %v389_v16 }
 0x41f   :  { %584 = shalt.err (!%p581_p8)
}
 0x420   :  { %s585_s25 = scalar_lea.hbm %s748_s6, 32 }
 0x421   :  { %p586_p9 = scmp.ne.s32.totalorder %s748_s6, %s585_s25  ;;  %p589_p10 = scmp.lt.u32.totalorder %s585_s25, %s748_s6 }
 0x423   :  { %p591_p11 = pnand %p589_p10, %p586_p9 }
 0x425   :  { %594 = shalt.err (!%p591_p11)
}
 0x426   :  { %401 = dma.vmem_to_hbm [thread:$0]  %s399_s1, 32, %s748_s6, [#allocation4]  }
 0x427   :  { %601 = dma.done.wait [#allocation4], 32  }
 0x428   :  { %602 = vsyncadd [#allocation4], 4294967264 }
 0x429   :  { %405 = vsyncpa [#allocation3], 1 }
 0x42a   :  { %406 = vsyncpa [#allocation6], 1 }
 0x42b   :  { %407 = vsyncpa [#allocation9], 1 }
 0x42c   :  { %408 = vsyncpa [#allocation4], 1 }

</bundles_post_ra>
